<compile_context>
chip_gen: v6e
topology: v6e:2x2x1
jax: 0.10.0
libtpu: 0.0.40
codegen_flags: <defaults>
</compile_context>

<pallas_src>
import math

import jax
import jax.numpy as jnp
from jax.experimental import pallas as pl
from jax.experimental.pallas import tpu as pltpu


def _round_up(v, m):
    return ((v + m - 1) // m) * m


def _downsample_kernel(xcol_ref, w_ref, b_ref, o_ref):
    """One grid step = one (batch, M-tile).

    xcol_ref: (TM, 9*C)  im2col'd input tile, taps folded into the channel axis
    w_ref:    (9*C, C)   reshaped conv weight (held across the grid)
    b_ref:    (1, C)     bias (f32)
    o_ref:    (TM, C)    conv output tile
    """
    acc = jnp.dot(xcol_ref[...], w_ref[...], preferred_element_type=jnp.float32)
    o_ref[...] = (acc + b_ref[...]).astype(o_ref.dtype)


def _pick_tile_m(m, k, c, in_itemsize):
    """Largest power-of-two M-tile (>=8) whose pipelined buffers fit ~28 MiB."""
    budget = 28 * 1024 * 1024
    tm = 1024
    while tm > 8:
        est = (2 * tm * k * in_itemsize      # xcol tile, double buffered
               + 2 * tm * c * 4              # output tile (conservatively f32)
               + 2 * k * c * in_itemsize     # weight (held)
               + 2 * c * 4)                  # bias
        if est <= budget:
            break
        tm //= 2
    # never exceed the (8-rounded) number of output pixels
    return min(tm, _round_up(m, 8))


def downsample_forward(x_nchw, weight_oihw, bias, temb=None, *,
                       compute_dtype=jnp.bfloat16):
    """Equivalent of DownSample.forward(x, temb). temb is ignored (as in PyTorch)."""
    del temb  # unused by the PyTorch module as well
    out_dtype = x_nchw.dtype
    B, C, H, W = x_nchw.shape
    Ho = (H + 2 - 3) // 2 + 1
    Wo = (W + 2 - 3) // 2 + 1
    M = Ho * Wo
    K = 9 * C

    # ---- JAX glue: layout + im2col with taps folded into the channel axis ----
    # TODO(synk): in a real NHWC network the two NCHW<->NHWC transposes disappear.
    x_nhwc = jnp.transpose(x_nchw, (0, 2, 3, 1)).astype(compute_dtype)  # (B,H,W,C)
    xp = jnp.pad(x_nhwc, ((0, 0), (1, 1), (1, 1), (0, 0)))              # (B,H+2,W+2,C)
    taps = []
    for dy in range(3):
        for dx in range(3):
            taps.append(xp[:, dy::2, dx::2, :][:, :Ho, :Wo, :])         # (B,Ho,Wo,C)
    xcol = jnp.concatenate(taps, axis=-1).reshape(B, M, K)              # (B, M, 9C)

    # tile M; pad rows so the grid divides evenly (zero rows are sliced off later)
    tm = _pick_tile_m(M, K, C, jnp.dtype(compute_dtype).itemsize)
    Mp = _round_up(M, tm)
    if Mp != M:
        xcol = jnp.pad(xcol, ((0, 0), (0, Mp - M), (0, 0)))

    # OIHW -> (kh, kw, Cin, Cout) -> (9*C, C); row order matches the tap order above
    w2 = jnp.transpose(weight_oihw, (2, 3, 1, 0)).reshape(K, C).astype(compute_dtype)
    b2 = bias.astype(jnp.float32).reshape(1, C)

    # ---- Pallas kernel: single fused matmul per (batch, M-tile) ----
    out_flat = pl.pallas_call(
        _downsample_kernel,
        out_shape=jax.ShapeDtypeStruct((B, Mp, C), out_dtype),
        grid_spec=pltpu.PrefetchScalarGridSpec(
            num_scalar_prefetch=0,
            grid=(B, Mp // tm),
            in_specs=[
                pl.BlockSpec((None, tm, K), lambda b, m: (b, m, 0)),
                pl.BlockSpec((K, C), lambda b, m: (0, 0)),
                pl.BlockSpec((1, C), lambda b, m: (0, 0)),
            ],
            out_specs=pl.BlockSpec((None, tm, C), lambda b, m: (b, m, 0)),
        ),
        compiler_params=pltpu.CompilerParams(
            dimension_semantics=("parallel", "parallel"),
            vmem_limit_bytes=48 * 1024 * 1024,
        ),
    )(xcol, w2, b2)

    out_nhwc = out_flat[:, :M, :].reshape(B, Ho, Wo, C)
    return jnp.transpose(out_nhwc, (0, 3, 1, 2))                        # back to NCHW


def init_downsample_params(key, in_ch):
    """xavier_uniform_ weight (OIHW), zero bias — matches module.initialize()."""
    fan_in = in_ch * 3 * 3
    fan_out = in_ch * 3 * 3
    bound = math.sqrt(6.0 / (fan_in + fan_out))
    weight = jax.random.uniform(
        key, (in_ch, in_ch, 3, 3), dtype=jnp.float32, minval=-bound, maxval=bound
    )
    bias = jnp.zeros((in_ch,), dtype=jnp.float32)
    return weight, bias


def _conv_ref(x, w, b):
    C = x.shape[1]
    return jax.lax.conv_general_dilated(
        x, w,
        window_strides=(2, 2),
        padding=((1, 1), (1, 1)),
        dimension_numbers=("NCHW", "OIHW", "NCHW"),
    ) + b.reshape(1, C, 1, 1)


if __name__ == "__main__":
    key = jax.random.PRNGKey(0)
    k_x, k_t, k_w = jax.random.split(key, 3)

    B, C, H, W = 2, 4, 16, 16
    x = jax.random.normal(k_x, (B, C, H, W), dtype=jnp.float32)
    temb = jax.random.normal(k_t, (B, 32), dtype=jnp.float32)  # unused, as in PyTorch

    weight, bias = init_downsample_params(k_w, C)

    # default path: bf16 activations/weights, f32 accumulation
    out_bf16 = jax.block_until_ready(downsample_forward(x, weight, bias, temb))
    assert out_bf16.shape == (B, C, (H + 1) // 2, (W + 1) // 2)
    ref_bf16 = _conv_ref(x.astype(jnp.bfloat16).astype(jnp.float32),
                         weight.astype(jnp.bfloat16).astype(jnp.float32), bias)
    assert jnp.allclose(out_bf16, ref_bf16, atol=1e-2, rtol=1e-2)

    # strict f32 path against XLA's native strided conv (same semantics as PyTorch)
    out_f32 = jax.block_until_ready(
        downsample_forward(x, weight, bias, temb, compute_dtype=jnp.float32))
    ref_f32 = _conv_ref(x, weight, bias)
    assert jnp.allclose(out_f32, ref_f32, atol=1e-4, rtol=1e-4)

    print("KERNEL_OK")
</pallas_src>

<mosaic_0001>
module attributes {stable_mosaic.version = 11 : i64} {
  func.func @_downsample_kernel(%arg0: i32, %arg1: i32, %arg2: memref<1x64x36xbf16, #tpu.memory_space<vmem>>, %arg3: memref<36x4xbf16, #tpu.memory_space<vmem>>, %arg4: memref<1x4xf32, #tpu.memory_space<vmem>>, %arg5: memref<1x64x4xf32, #tpu.memory_space<vmem>>) attributes {dimension_semantics = [#tpu.dimension_semantics<parallel>, #tpu.dimension_semantics<parallel>], iteration_bounds = array<i64: 2, 1>, scalar_prefetch = 0 : i64, scratch_operands = 0 : i64, tpu.core_type = #tpu.core_type<tc>, window_params = [{transform_indices = @transform_0, window_bounds = array<i64: 1, 64, 36>}, {pipeline_mode = #tpu.pipeline_mode<synchronous>, transform_indices = @transform_1, window_bounds = array<i64: 36, 4>}, {pipeline_mode = #tpu.pipeline_mode<synchronous>, transform_indices = @transform_2, window_bounds = array<i64: 1, 4>}, {transform_indices = @transform_3, window_bounds = array<i64: 1, 64, 4>}]} {
    %c0 = arith.constant 0 : index
    %c0_0 = arith.constant 0 : index
    %c0_1 = arith.constant 0 : index
    %0 = vector.load %arg2[%c0, %c0_0, %c0_1] : memref<1x64x36xbf16, #tpu.memory_space<vmem>>, vector<1x64x36xbf16>
    %1 = vector.shape_cast %0 : vector<1x64x36xbf16> to vector<64x36xbf16>
    %c0_2 = arith.constant 0 : index
    %c0_3 = arith.constant 0 : index
    %2 = vector.load %arg3[%c0_2, %c0_3] : memref<36x4xbf16, #tpu.memory_space<vmem>>, vector<36x4xbf16>
    %cst = arith.constant dense<0.000000e+00> : vector<64x4xf32>
    %3 = tpu.matmul %1, %2, %cst {dimension_numbers = #tpu.dot_dimension_numbers<[1], [0], [0], [1], [0, 0, 1, 1], [], []>} : vector<64x36xbf16>, vector<36x4xbf16>, vector<64x4xf32> -> vector<64x4xf32>
    %c0_4 = arith.constant 0 : index
    %c0_5 = arith.constant 0 : index
    %4 = vector.load %arg4[%c0_4, %c0_5] : memref<1x4xf32, #tpu.memory_space<vmem>>, vector<1x4xf32>
    %5 = vector.broadcast %4 : vector<1x4xf32> to vector<64x4xf32>
    %6 = arith.addf %3, %5 : vector<64x4xf32>
    %c0_6 = arith.constant 0 : index
    %c0_7 = arith.constant 0 : index
    %c0_8 = arith.constant 0 : index
    %7 = vector.load %arg5[%c0_6, %c0_7, %c0_8] : memref<1x64x4xf32, #tpu.memory_space<vmem>>, vector<1x64x4xf32>
    %8 = vector.shape_cast %7 : vector<1x64x4xf32> to vector<64x4xf32>
    %9 = vector.shape_cast %6 : vector<64x4xf32> to vector<1x64x4xf32>
    tpu.vector_store %arg5[%c0_6, %c0_7, %c0_8], %9 {strides = array<i32>} : memref<1x64x4xf32, #tpu.memory_space<vmem>>, vector<1x64x4xf32>,
    return
  }
  func.func @transform_0(%arg0: i32, %arg1: i32) -> (i32, i32, i32) {
    %c0_i32 = arith.constant 0 : i32
    %c0_i32_0 = arith.constant 0 : i32
    return %arg0, %arg1, %c0_i32 : i32, i32, i32
  }
  func.func @transform_1(%arg0: i32, %arg1: i32) -> (i32, i32) {
    %c0_i32 = arith.constant 0 : i32
    %c0_i32_0 = arith.constant 0 : i32
    %c0_i32_1 = arith.constant 0 : i32
    return %c0_i32, %c0_i32_0 : i32, i32
  }
  func.func @transform_2(%arg0: i32, %arg1: i32) -> (i32, i32) {
    %c0_i32 = arith.constant 0 : i32
    %c0_i32_0 = arith.constant 0 : i32
    %c0_i32_1 = arith.constant 0 : i32
    return %c0_i32, %c0_i32_0 : i32, i32
  }
  func.func @transform_3(%arg0: i32, %arg1: i32) -> (i32, i32, i32) {
    %c0_i32 = arith.constant 0 : i32
    %c0_i32_0 = arith.constant 0 : i32
    return %arg0, %arg1, %c0_i32 : i32, i32, i32
  }
}

</mosaic_0001>

<bundles_post_ra>
// kernel: tpu_custom_call.1
= control target key start
LH: loop header
LB: loop body
LE: loop exit
PB: predicated region body
PF: predicated region fallthrough
CT: control target
= control target key end

     0   :  { %s573_s12 = smov 0   ;;  %s575_s13 = smov 0   ;;  %s626_s0 = inlined_call_operand.vmem [shape: bf16[2,64,36], index: 0, kind: input, shape index: {}]   ;;  %s627_s1 = inlined_call_operand.vmem [shape: bf16[36,4], index: 1, kind: input, shape index: {}]   ;;  %s628_s2 = inlined_call_operand.vmem [shape: f32[1,4], index: 2, kind: input, shape index: {}]   ;;  %s629_s3 = inlined_call_operand.vmem [shape: f32[2,64,4], index: 3, kind: output, shape index: {}]  }
   0x1   :  { %s577_s14 = smov 0  }
   0x2 LB: > { %s25_s15 = sadd.s32 1, %s547_s13  ;;  %p448_p0 = scmp.ge.s32.totalorder %s551_s14, 1  ;;  %s551_s14 = sphi %s577_s14, %s13_s14   ;;  %s547_s13 = sphi %s575_s13, %s631_s13   ;;  %s543_s12 = sphi %s573_s12, %s630_s12  }
   0x3   : > { %p27_p1 = scmp.ge.s32.totalorder %s25_s15, 2  ;;  %p158_p2 = scmp.lt.s32.totalorder %s551_s14, 3 }
   0x5   : > { %s633_s15 = smov (%p27_p1, %s25_s15), 0  ;;  %p159_p3 = pnand %p448_p0, %p158_p2 }
   0x6   : > { %p191_p4 = scmp.lt.s32.totalorder (!%p159_p3), %s543_s12, 1 }
   0x7   : > { %162 = sbr.rel (%p159_p3) target bundleno = 227 (0xe3), region = 32 }
   0xc   : > { %v522_v0 = vld [vmem:[%s627_s1 + $0x10] ss:$0 sps:$4 sm:$0x33]   ;;  %vm279_vm0 = vcmask 1041408   ;;  %v523_v1 = vld [vmem:[%s627_s1 + $0x8] sm:$0xff]   ;;  %s635_s12 = smov (!%p191_p4, %s543_s12), 1 }
   0xd   : > { %496 = vmatprep.subr.msk.bf16.mxu0 %vm279_vm0, %v522_v0  ;;  %497 = vmatprep.subr.msk.bf16.mxu1 %vm279_vm0, %v522_v0  ;;  %v281_v2 = vsel %vm279_vm0, %v522_v0, 0  ;;  %v524_v3 = vld [vmem:[%s627_s1] sm:$0xff]   ;;  %s467_s22 = sshll.u32 %s635_s12, 5  ;;  %vm266_vm1 = vcmask 293888   ;;  %s468_s26 = sshll.u32 %s635_s12, 6  ;;  %vm348_vm2 = vcmask 31744  }
   0xe   : > { %477 = vmatpush3.bf16.msra.mxu0 %v281_v2  ;;  %493 = vmatpush3.bf16.msra.mxu1 %v281_v2  ;;  %s198_s25 = scalar_lea.vmem %s626_s0, %s467_s22  ;;  %v453_v8 = vld [vmem:[%s628_s2] ss:$0 sm:$0xff]  ;;  %s208_s4 = scalar_lea.vmem %s629_s3, %s468_s26 }
   0xf   : > { %478 = vmatprep.subr.bf16.mxu0 %v523_v1  ;;  %491 = vmatprep.subr.bf16.mxu1 %v523_v1  ;;  %v525_v4 = vld [vmem:[%s198_s25] sm:$0xff]   ;;  %v526_v5 = vld [vmem:[%s198_s25 + $0x10] sm:$0xff]   ;;  %v527_v6 = vld [vmem:[%s198_s25 + $0x8] sm:$0xff]  }
  0x10   : > { %482 = vmatprep.mubr.msk.bf16.mxu0 %vm266_vm1, %v525_v4  ;;  %486 = vmatprep.mubr.msk.bf16.mxu1 %vm266_vm1, %v526_v5  ;;  %v528_v7 = vld [vmem:[%s198_s25 + $0x18] sm:$0xff]  }
  0x12   : > { %479 = vmatpush3.bf16.msra.mxu0 %v523_v1  ;;  %494 = vmatpush3.bf16.msra.mxu1 %v523_v1 }
  0x13   : > { %480 = vmatprep.subr.bf16.mxu0 %v524_v3  ;;  %492 = vmatprep.subr.bf16.mxu1 %v524_v3 }
  0x16   : > { %481 = vmatpush3.bf16.msra.mxu0 %v524_v3  ;;  %495 = vmatpush3.bf16.msra.mxu1 %v524_v3 }
  0x19   : > { %483 = vmatmul.mubr.msk.bf16.vlgmr.msra.gmra.mxu0 %vm266_vm1, %v527_v6  ;;  %487 = vmatmul.mubr.msk.bf16.vlgmr.msra.gmra.mxu1 %vm266_vm1, %v528_v7 }
  0xd9   : > { %v484_v9 = vpop.f32.mrf.mxu0  ;;  %v488_v10 = vpop.f32.mrf.mxu1 }
  0xda   : > { %v326_v11 = vadd.f32 %v484_v9, %v453_v8  ;;  %v342_v12 = vadd.f32 %v488_v10, %v453_v8 }
  0xdb   : > { %v317_v13 = vpop.f32.mrf.mxu0  ;;  %v333_v14 = vpop.f32.mrf.mxu1 }
  0xdc   : > { %351 = vst.msk [vmem:[%s208_s4 + $0x10] sm:$0xff] %vm348_vm2, %v326_v11  ;;  %355 = vst.msk [vmem:[%s208_s4 + $0x30] sm:$0xff] %vm348_vm2, %v342_v12  ;;  %v318_v15 = vadd.f32 %v453_v8, %v317_v13  ;;  %v334_v16 = vadd.f32 %v453_v8, %v333_v14 }
  0xdd   : > { %v485_v17 = vpop.f32.mrf.mxu0  ;;  %v489_v18 = vpop.f32.mrf.mxu1 }
  0xde   : > { %349 = vst.msk [vmem:[%s208_s4] sm:$0xff] %vm348_vm2, %v318_v15  ;;  %353 = vst.msk [vmem:[%s208_s4 + $0x20] sm:$0xff] %vm348_vm2, %v334_v16  ;;  %v329_v19 = vadd.f32 %v485_v17, %v453_v8  ;;  %v345_v20 = vadd.f32 %v489_v18, %v453_v8 }
  0xdf   : > { %v320_v21 = vpop.f32.mrf.mxu0  ;;  %v336_v22 = vpop.f32.mrf.mxu1 }
  0xe0   : > { %352 = vst.msk [vmem:[%s208_s4 + $0x18] sm:$0xff] %vm348_vm2, %v329_v19  ;;  %356 = vst.msk [vmem:[%s208_s4 + $0x38] sm:$0xff] %vm348_vm2, %v345_v20  ;;  %v321_v23 = vadd.f32 %v453_v8, %v320_v21  ;;  %v337_v24 = vadd.f32 %v453_v8, %v336_v22 }
  0xe2   : > { %350 = vst.msk [vmem:[%s208_s4 + $0x8] sm:$0xff] %vm348_vm2, %v321_v23  ;;  %354 = vst.msk [vmem:[%s208_s4 + $0x28] sm:$0xff] %vm348_vm2, %v337_v24 }
  0xe3 PF: > { %s13_s14 = sadd.s32 1, %s551_s14   ;;  %s630_s12 = smov %s547_s13 }
  0xe4   : > { %p10_p5 = scmp.ge.s32.totalorder %s13_s14, 4   ;;  %s631_s13 = smov %s633_s15 }
  0xe6   :  { %12 = sbr.rel (!%p10_p5) target bundleno = 2 (0x2), region = 62 }

</bundles_post_ra>
